<compile_context>
chip_gen: v7x
topology: tpu7x:2x2x1
jax: 0.10.0
libtpu: 0.0.40
codegen_flags: <defaults>
</compile_context>

<pallas_src>
import functools

import jax
import jax.numpy as jnp
from jax import lax
from jax.experimental import pallas as pl
from jax.experimental.pallas import tpu as pltpu


def _round_up(x, m):
    return ((x + m - 1) // m) * m


def lstm_kernel(x_ref, p_ref, o_ref, gx_ref, *,
                seq_len, hidden_dim, n_class,
                d_pad, off_wh, off_b, off_wc, off_bc, lane):
    H = hidden_dim
    L = lane

    # Static, sublane-aligned views into the single packed parameter slab.
    wx = p_ref[0:d_pad, :]                # (D_pad, L)
    wh = p_ref[off_wh:off_wh + H, :]      # (H, L)  -- loaded once, loop-invariant
    b = p_ref[off_b:off_b + 1, :]         # (1, L)
    wc = p_ref[off_wc:off_wc + H, :]      # (H, L)
    bc = p_ref[off_bc:off_bc + 1, :]      # (1, L)

    # Hoisted batched input projection for all time steps, staged in VMEM
    # scratch so the per-step row fetch is off the VALU/XLU critical path.
    gx_ref[...] = jnp.dot(x_ref[...], wx, preferred_element_type=jnp.float32) + b

    h = jnp.zeros((1, H), jnp.float32)
    cell = jnp.zeros((1, H), jnp.float32)
    og = jnp.zeros((1, H), jnp.float32)

    def step(gates_x_row, h, cell):
        # Only h @ Wh is truly serial across steps.
        gates = gates_x_row + jnp.dot(h, wh, preferred_element_type=jnp.float32)
        # Whole-vreg activations: 2 EUP passes over the full L-lane row.
        sig = jax.nn.sigmoid(gates)
        tnh = jnp.tanh(gates)
        f = sig[:, 0 * H:1 * H]           # forget gate
        i = sig[:, 1 * H:2 * H]           # input gate
        c = tnh[:, 2 * H:3 * H]           # cell update
        o = sig[:, 3 * H:4 * H]           # output gate
        cell = f * cell + i * c
        h = o * jnp.tanh(cell)
        return h, cell, o

    if seq_len <= 32:
        # Fully unrolled recurrence: static indices, full scheduler visibility.
        for t in range(seq_len):
            h, cell, og = step(gx_ref[t:t + 1, :], h, cell)
    else:
        # Bounded-unroll fallback for long sequences (flat vreg pressure).
        def body(t, carry):
            h, cell, _ = carry
            return step(gx_ref[pl.ds(t, 1), :], h, cell)
        h, cell, og = lax.fori_loop(0, seq_len, body, (h, cell, og), unroll=4)

    # classify(output_gate) + LogSoftmax, computed lane-dense over L columns,
    # masked down to the first n_class lanes (no sub-vreg reductions/stores).
    logits = jnp.dot(og, wc, preferred_element_type=jnp.float32) + bc  # (1, L)
    lane_ids = lax.broadcasted_iota(jnp.int32, (1, L), 1)
    valid = lane_ids < n_class
    m = jnp.max(jnp.where(valid, logits, -jnp.inf), axis=-1, keepdims=True)
    s = jnp.sum(jnp.where(valid, jnp.exp(logits - m), 0.0),
                axis=-1, keepdims=True)
    o_ref[...] = logits - (m + jnp.log(s))


def pack_inputs(x, wx, wh, b, wc, bc):
    """Pack x into a lane-dense tile and all params into one lane-dense slab."""
    S = x.shape[0]
    D = wx.shape[0]
    H = wh.shape[0]
    G = wx.shape[1]                       # 4H
    C = wc.shape[1]
    L = max(_round_up(G, 128), _round_up(C, 128))
    D_pad = _round_up(D, 128)
    S_pad = _round_up(max(S, 8), 8)

    x2d = x.reshape(S, D).astype(jnp.float32)
    x_pad = jnp.zeros((S_pad, D_pad), jnp.float32).at[:S, :D].set(x2d)

    off_wh = D_pad
    off_b = D_pad + H
    off_wc = _round_up(off_b + 1, 8)
    off_bc = off_wc + H
    rows = _round_up(off_bc + 1, 8)

    p = jnp.zeros((rows, L), jnp.float32)
    p = p.at[0:D, :G].set(wx)
    p = p.at[off_wh:off_wh + H, :G].set(wh)
    p = p.at[off_b, :G].set(b.reshape(G))
    p = p.at[off_wc:off_wc + H, :C].set(wc)
    p = p.at[off_bc, :C].set(bc.reshape(C))

    meta = dict(d_pad=D_pad, off_wh=off_wh, off_b=off_b, off_wc=off_wc,
                off_bc=off_bc, lane=L)
    return x_pad, p, S_pad, meta


def lstm_forward(x, wx, wh, b, wc, bc):
    S = x.shape[0]
    H = wh.shape[0]
    C = wc.shape[1]
    x_pad, params, S_pad, meta = pack_inputs(x, wx, wh, b, wc, bc)
    L = meta["lane"]

    kernel = functools.partial(lstm_kernel, seq_len=S, hidden_dim=H,
                               n_class=C, **meta)
    vmem = lambda: pl.BlockSpec(memory_space=pltpu.MemorySpace.VMEM)
    out = pl.pallas_call(
        kernel,
        out_shape=jax.ShapeDtypeStruct((1, L), jnp.float32),
        in_specs=[vmem(), vmem()],        # two lane-dense, fully-resident inputs
        out_specs=vmem(),
        scratch_shapes=[pltpu.VMEM((S_pad, L), jnp.float32)],
    )(x_pad, params)
    return out[:, :C]


def lstm_ref(x, wx, wh, b, wc, bc):
    """Pure-JAX reference mirroring the PyTorch forward exactly."""
    H = wh.shape[0]
    h = jnp.zeros((1, H), jnp.float32)
    cell = jnp.zeros((1, H), jnp.float32)
    o = None
    for t in range(x.shape[0]):
        xt = x[t]                                    # (1, D)
        gates = xt @ wx + h @ wh + b
        f = jax.nn.sigmoid(gates[:, 0 * H:1 * H])
        i = jax.nn.sigmoid(gates[:, 1 * H:2 * H])
        c = jnp.tanh(gates[:, 2 * H:3 * H])
        o = jax.nn.sigmoid(gates[:, 3 * H:4 * H])
        cell = f * cell + i * c
        h = o * jnp.tanh(cell)
    logits = o @ wc + bc
    return jax.nn.log_softmax(logits, axis=1)


if __name__ == "__main__":
    seq_len = 8
    input_dim = 16
    hidden_dim = 32
    output_class = 10

    key = jax.random.PRNGKey(0)
    kx, kw, kb, kwc, kbc = jax.random.split(key, 5)

    # Deterministic synthetic params (PyTorch-Linear-style uniform bounds).
    in_feat = input_dim + hidden_dim
    bound = 1.0 / jnp.sqrt(jnp.float32(in_feat))
    # Combined weight over the 4 gates, shape (in_feat, 4H); split into x/h parts.
    w_all = jax.random.uniform(kw, (in_feat, 4 * hidden_dim),
                               jnp.float32, -bound, bound)
    b_all = jax.random.uniform(kb, (1, 4 * hidden_dim),
                               jnp.float32, -bound, bound)
    wx = w_all[:input_dim]              # (D, 4H)
    wh = w_all[input_dim:]              # (H, 4H)

    bound_c = 1.0 / jnp.sqrt(jnp.float32(hidden_dim))
    wc = jax.random.uniform(kwc, (hidden_dim, output_class),
                            jnp.float32, -bound_c, bound_c)
    bc = jax.random.uniform(kbc, (1, output_class),
                            jnp.float32, -bound_c, bound_c)

    x = jax.random.normal(kx, (seq_len, 1, input_dim), jnp.float32)

    out = lstm_forward(x, wx, wh, b_all, wc, bc)
    out = jax.block_until_ready(out)

    ref = lstm_ref(x, wx, wh, b_all, wc, bc)
    assert out.shape == (1, output_class)
    assert jnp.allclose(out, ref, atol=1e-5, rtol=1e-5), (out, ref)

    print("KERNEL_OK")
</pallas_src>

<mosaic_0001>
module attributes {stable_mosaic.version = 11 : i64} {
  func.func @lstm_kernel(%arg0: memref<8x128xf32, #tpu.memory_space<vmem>>, %arg1: memref<208x128xf32, #tpu.memory_space<vmem>>, %arg2: memref<1x128xf32, #tpu.memory_space<vmem>>, %arg3: memref<8x128xf32, #tpu.memory_space<vmem>>) attributes {dimension_semantics = [], scalar_prefetch = 0 : i64, scratch_operands = 1 : i64, tpu.core_type = #tpu.core_type<tc>} {
    %c0 = arith.constant 0 : index
    %c0_0 = arith.constant 0 : index
    %0 = vector.load %arg1[%c0, %c0_0] : memref<208x128xf32, #tpu.memory_space<vmem>>, vector<128x128xf32>
    %c128 = arith.constant 128 : index
    %c0_1 = arith.constant 0 : index
    %1 = vector.load %arg1[%c128, %c0_1] : memref<208x128xf32, #tpu.memory_space<vmem>>, vector<32x128xf32>
    %c160 = arith.constant 160 : index
    %c0_2 = arith.constant 0 : index
    %2 = vector.load %arg1[%c160, %c0_2] : memref<208x128xf32, #tpu.memory_space<vmem>>, vector<1x128xf32>
    %c168 = arith.constant 168 : index
    %c0_3 = arith.constant 0 : index
    %3 = vector.load %arg1[%c168, %c0_3] : memref<208x128xf32, #tpu.memory_space<vmem>>, vector<32x128xf32>
    %c200 = arith.constant 200 : index
    %c0_4 = arith.constant 0 : index
    %4 = vector.load %arg1[%c200, %c0_4] : memref<208x128xf32, #tpu.memory_space<vmem>>, vector<1x128xf32>
    %c0_5 = arith.constant 0 : index
    %c0_6 = arith.constant 0 : index
    %5 = vector.load %arg0[%c0_5, %c0_6] : memref<8x128xf32, #tpu.memory_space<vmem>>, vector<8x128xf32>
    %cst = arith.constant dense<0.000000e+00> : vector<8x128xf32>
    %6 = tpu.matmul %5, %0, %cst {dimension_numbers = #tpu.dot_dimension_numbers<[1], [0], [0], [1], [0, 0, 1, 1], [], []>} : vector<8x128xf32>, vector<128x128xf32>, vector<8x128xf32> -> vector<8x128xf32>
    %7 = vector.broadcast %2 : vector<1x128xf32> to vector<8x128xf32>
    %8 = arith.addf %6, %7 : vector<8x128xf32>
    %c0_7 = arith.constant 0 : index
    %c0_8 = arith.constant 0 : index
    %9 = vector.load %arg3[%c0_7, %c0_8] : memref<8x128xf32, #tpu.memory_space<vmem>>, vector<8x128xf32>
    tpu.vector_store %arg3[%c0_7, %c0_8], %8 {strides = array<i32>} : memref<8x128xf32, #tpu.memory_space<vmem>>, vector<8x128xf32>,
    %cst_9 = arith.constant 0.000000e+00 : f32
    %10 = vector.broadcast %cst_9 : f32 to vector<1x32xf32>
    %cst_10 = arith.constant 0.000000e+00 : f32
    %11 = vector.broadcast %cst_10 : f32 to vector<1x32xf32>
    %c0_11 = arith.constant 0 : index
    %c0_12 = arith.constant 0 : index
    %12 = vector.load %arg3[%c0_11, %c0_12] : memref<8x128xf32, #tpu.memory_space<vmem>>, vector<1x128xf32>
    %cst_13 = arith.constant dense<0.000000e+00> : vector<1x128xf32>
    %13 = tpu.matmul %10, %1, %cst_13 {dimension_numbers = #tpu.dot_dimension_numbers<[1], [0], [0], [1], [0, 0, 1, 1], [], []>} : vector<1x32xf32>, vector<32x128xf32>, vector<1x128xf32> -> vector<1x128xf32>
    %14 = arith.addf %12, %13 : vector<1x128xf32>
    %15 = arith.negf %14 : vector<1x128xf32>
    %16 = math.exp %15 : vector<1x128xf32>
    %cst_14 = arith.constant 1.000000e+00 : f32
    %17 = vector.broadcast %cst_14 : f32 to vector<1x128xf32>
    %18 = arith.addf %17, %16 : vector<1x128xf32>
    %19 = arith.divf %17, %18 : vector<1x128xf32>
    %20 = math.tanh %14 : vector<1x128xf32>
    %21 = vector.extract_strided_slice %19 {offsets = [0, 0], sizes = [1, 32], strides = [1, 1]} : vector<1x128xf32> to vector<1x32xf32>
    %22 = vector.extract_strided_slice %19 {offsets = [0, 32], sizes = [1, 32], strides = [1, 1]} : vector<1x128xf32> to vector<1x32xf32>
    %23 = vector.extract_strided_slice %20 {offsets = [0, 64], sizes = [1, 32], strides = [1, 1]} : vector<1x128xf32> to vector<1x32xf32>
    %24 = vector.extract_strided_slice %19 {offsets = [0, 96], sizes = [1, 32], strides = [1, 1]} : vector<1x128xf32> to vector<1x32xf32>
    %25 = arith.mulf %21, %11 : vector<1x32xf32>
    %26 = arith.mulf %22, %23 : vector<1x32xf32>
    %27 = arith.addf %25, %26 : vector<1x32xf32>
    %28 = math.tanh %27 : vector<1x32xf32>
    %29 = arith.mulf %24, %28 : vector<1x32xf32>
    %c1 = arith.constant 1 : index
    %c0_15 = arith.constant 0 : index
    %30 = vector.load %arg3[%c1, %c0_15] : memref<8x128xf32, #tpu.memory_space<vmem>>, vector<1x128xf32>
    %cst_16 = arith.constant dense<0.000000e+00> : vector<1x128xf32>
    %31 = tpu.matmul %29, %1, %cst_16 {dimension_numbers = #tpu.dot_dimension_numbers<[1], [0], [0], [1], [0, 0, 1, 1], [], []>} : vector<1x32xf32>, vector<32x128xf32>, vector<1x128xf32> -> vector<1x128xf32>
    %32 = arith.addf %30, %31 : vector<1x128xf32>
    %33 = arith.negf %32 : vector<1x128xf32>
    %34 = math.exp %33 : vector<1x128xf32>
    %cst_17 = arith.constant 1.000000e+00 : f32
    %35 = vector.broadcast %cst_17 : f32 to vector<1x128xf32>
    %36 = arith.addf %35, %34 : vector<1x128xf32>
    %37 = arith.divf %35, %36 : vector<1x128xf32>
    %38 = math.tanh %32 : vector<1x128xf32>
    %39 = vector.extract_strided_slice %37 {offsets = [0, 0], sizes = [1, 32], strides = [1, 1]} : vector<1x128xf32> to vector<1x32xf32>
    %40 = vector.extract_strided_slice %37 {offsets = [0, 32], sizes = [1, 32], strides = [1, 1]} : vector<1x128xf32> to vector<1x32xf32>
    %41 = vector.extract_strided_slice %38 {offsets = [0, 64], sizes = [1, 32], strides = [1, 1]} : vector<1x128xf32> to vector<1x32xf32>
    %42 = vector.extract_strided_slice %37 {offsets = [0, 96], sizes = [1, 32], strides = [1, 1]} : vector<1x128xf32> to vector<1x32xf32>
    %43 = arith.mulf %39, %27 : vector<1x32xf32>
    %44 = arith.mulf %40, %41 : vector<1x32xf32>
    %45 = arith.addf %43, %44 : vector<1x32xf32>
    %46 = math.tanh %45 : vector<1x32xf32>
    %47 = arith.mulf %42, %46 : vector<1x32xf32>
    %c2 = arith.constant 2 : index
    %c0_18 = arith.constant 0 : index
    %48 = vector.load %arg3[%c2, %c0_18] : memref<8x128xf32, #tpu.memory_space<vmem>>, vector<1x128xf32>
    %cst_19 = arith.constant dense<0.000000e+00> : vector<1x128xf32>
    %49 = tpu.matmul %47, %1, %cst_19 {dimension_numbers = #tpu.dot_dimension_numbers<[1], [0], [0], [1], [0, 0, 1, 1], [], []>} : vector<1x32xf32>, vector<32x128xf32>, vector<1x128xf32> -> vector<1x128xf32>
    %50 = arith.addf %48, %49 : vector<1x128xf32>
    %51 = arith.negf %50 : vector<1x128xf32>
    %52 = math.exp %51 : vector<1x128xf32>
    %cst_20 = arith.constant 1.000000e+00 : f32
    %53 = vector.broadcast %cst_20 : f32 to vector<1x128xf32>
    %54 = arith.addf %53, %52 : vector<1x128xf32>
    %55 = arith.divf %53, %54 : vector<1x128xf32>
    %56 = math.tanh %50 : vector<1x128xf32>
    %57 = vector.extract_strided_slice %55 {offsets = [0, 0], sizes = [1, 32], strides = [1, 1]} : vector<1x128xf32> to vector<1x32xf32>
    %58 = vector.extract_strided_slice %55 {offsets = [0, 32], sizes = [1, 32], strides = [1, 1]} : vector<1x128xf32> to vector<1x32xf32>
    %59 = vector.extract_strided_slice %56 {offsets = [0, 64], sizes = [1, 32], strides = [1, 1]} : vector<1x128xf32> to vector<1x32xf32>
    %60 = vector.extract_strided_slice %55 {offsets = [0, 96], sizes = [1, 32], strides = [1, 1]} : vector<1x128xf32> to vector<1x32xf32>
    %61 = arith.mulf %57, %45 : vector<1x32xf32>
    %62 = arith.mulf %58, %59 : vector<1x32xf32>
    %63 = arith.addf %61, %62 : vector<1x32xf32>
    %64 = math.tanh %63 : vector<1x32xf32>
    %65 = arith.mulf %60, %64 : vector<1x32xf32>
    %c3 = arith.constant 3 : index
    %c0_21 = arith.constant 0 : index
    %66 = vector.load %arg3[%c3, %c0_21] : memref<8x128xf32, #tpu.memory_space<vmem>>, vector<1x128xf32>
    %cst_22 = arith.constant dense<0.000000e+00> : vector<1x128xf32>
    %67 = tpu.matmul %65, %1, %cst_22 {dimension_numbers = #tpu.dot_dimension_numbers<[1], [0], [0], [1], [0, 0, 1, 1], [], []>} : vector<1x32xf32>, vector<32x128xf32>, vector<1x128xf32> -> vector<1x128xf32>
    %68 = arith.addf %66, %67 : vector<1x128xf32>
    %69 = arith.negf %68 : vector<1x128xf32>
    %70 = math.exp %69 : vector<1x128xf32>
    %cst_23 = arith.constant 1.000000e+00 : f32
    %71 = vector.broadcast %cst_23 : f32 to vector<1x128xf32>
    %72 = arith.addf %71, %70 : vector<1x128xf32>
    %73 = arith.divf %71, %72 : vector<1x128xf32>
    %74 = math.tanh %68 : vector<1x128xf32>
    %75 = vector.extract_strided_slice %73 {offsets = [0, 0], sizes = [1, 32], strides = [1, 1]} : vector<1x128xf32> to vector<1x32xf32>
    %76 = vector.extract_strided_slice %73 {offsets = [0, 32], sizes = [1, 32], strides = [1, 1]} : vector<1x128xf32> to vector<1x32xf32>
    %77 = vector.extract_strided_slice %74 {offsets = [0, 64], sizes = [1, 32], strides = [1, 1]} : vector<1x128xf32> to vector<1x32xf32>
    %78 = vector.extract_strided_slice %73 {offsets = [0, 96], sizes = [1, 32], strides = [1, 1]} : vector<1x128xf32> to vector<1x32xf32>
    %79 = arith.mulf %75, %63 : vector<1x32xf32>
    %80 = arith.mulf %76, %77 : vector<1x32xf32>
    %81 = arith.addf %79, %80 : vector<1x32xf32>
    %82 = math.tanh %81 : vector<1x32xf32>
    %83 = arith.mulf %78, %82 : vector<1x32xf32>
    %c4 = arith.constant 4 : index
    %c0_24 = arith.constant 0 : index
    %84 = vector.load %arg3[%c4, %c0_24] : memref<8x128xf32, #tpu.memory_space<vmem>>, vector<1x128xf32>
    %cst_25 = arith.constant dense<0.000000e+00> : vector<1x128xf32>
    %85 = tpu.matmul %83, %1, %cst_25 {dimension_numbers = #tpu.dot_dimension_numbers<[1], [0], [0], [1], [0, 0, 1, 1], [], []>} : vector<1x32xf32>, vector<32x128xf32>, vector<1x128xf32> -> vector<1x128xf32>
    %86 = arith.addf %84, %85 : vector<1x128xf32>
    %87 = arith.negf %86 : vector<1x128xf32>
    %88 = math.exp %87 : vector<1x128xf32>
    %cst_26 = arith.constant 1.000000e+00 : f32
    %89 = vector.broadcast %cst_26 : f32 to vector<1x128xf32>
    %90 = arith.addf %89, %88 : vector<1x128xf32>
    %91 = arith.divf %89, %90 : vector<1x128xf32>
    %92 = math.tanh %86 : vector<1x128xf32>
    %93 = vector.extract_strided_slice %91 {offsets = [0, 0], sizes = [1, 32], strides = [1, 1]} : vector<1x128xf32> to vector<1x32xf32>
    %94 = vector.extract_strided_slice %91 {offsets = [0, 32], sizes = [1, 32], strides = [1, 1]} : vector<1x128xf32> to vector<1x32xf32>
    %95 = vector.extract_strided_slice %92 {offsets = [0, 64], sizes = [1, 32], strides = [1, 1]} : vector<1x128xf32> to vector<1x32xf32>
    %96 = vector.extract_strided_slice %91 {offsets = [0, 96], sizes = [1, 32], strides = [1, 1]} : vector<1x128xf32> to vector<1x32xf32>
    %97 = arith.mulf %93, %81 : vector<1x32xf32>
    %98 = arith.mulf %94, %95 : vector<1x32xf32>
    %99 = arith.addf %97, %98 : vector<1x32xf32>
    %100 = math.tanh %99 : vector<1x32xf32>
    %101 = arith.mulf %96, %100 : vector<1x32xf32>
    %c5 = arith.constant 5 : index
    %c0_27 = arith.constant 0 : index
    %102 = vector.load %arg3[%c5, %c0_27] : memref<8x128xf32, #tpu.memory_space<vmem>>, vector<1x128xf32>
    %cst_28 = arith.constant dense<0.000000e+00> : vector<1x128xf32>
    %103 = tpu.matmul %101, %1, %cst_28 {dimension_numbers = #tpu.dot_dimension_numbers<[1], [0], [0], [1], [0, 0, 1, 1], [], []>} : vector<1x32xf32>, vector<32x128xf32>, vector<1x128xf32> -> vector<1x128xf32>
    %104 = arith.addf %102, %103 : vector<1x128xf32>
    %105 = arith.negf %104 : vector<1x128xf32>
    %106 = math.exp %105 : vector<1x128xf32>
    %cst_29 = arith.constant 1.000000e+00 : f32
    %107 = vector.broadcast %cst_29 : f32 to vector<1x128xf32>
    %108 = arith.addf %107, %106 : vector<1x128xf32>
    %109 = arith.divf %107, %108 : vector<1x128xf32>
    %110 = math.tanh %104 : vector<1x128xf32>
    %111 = vector.extract_strided_slice %109 {offsets = [0, 0], sizes = [1, 32], strides = [1, 1]} : vector<1x128xf32> to vector<1x32xf32>
    %112 = vector.extract_strided_slice %109 {offsets = [0, 32], sizes = [1, 32], strides = [1, 1]} : vector<1x128xf32> to vector<1x32xf32>
    %113 = vector.extract_strided_slice %110 {offsets = [0, 64], sizes = [1, 32], strides = [1, 1]} : vector<1x128xf32> to vector<1x32xf32>
    %114 = vector.extract_strided_slice %109 {offsets = [0, 96], sizes = [1, 32], strides = [1, 1]} : vector<1x128xf32> to vector<1x32xf32>
    %115 = arith.mulf %111, %99 : vector<1x32xf32>
    %116 = arith.mulf %112, %113 : vector<1x32xf32>
    %117 = arith.addf %115, %116 : vector<1x32xf32>
    %118 = math.tanh %117 : vector<1x32xf32>
    %119 = arith.mulf %114, %118 : vector<1x32xf32>
    %c6 = arith.constant 6 : index
    %c0_30 = arith.constant 0 : index
    %120 = vector.load %arg3[%c6, %c0_30] : memref<8x128xf32, #tpu.memory_space<vmem>>, vector<1x128xf32>
    %cst_31 = arith.constant dense<0.000000e+00> : vector<1x128xf32>
    %121 = tpu.matmul %119, %1, %cst_31 {dimension_numbers = #tpu.dot_dimension_numbers<[1], [0], [0], [1], [0, 0, 1, 1], [], []>} : vector<1x32xf32>, vector<32x128xf32>, vector<1x128xf32> -> vector<1x128xf32>
    %122 = arith.addf %120, %121 : vector<1x128xf32>
    %123 = arith.negf %122 : vector<1x128xf32>
    %124 = math.exp %123 : vector<1x128xf32>
    %cst_32 = arith.constant 1.000000e+00 : f32
    %125 = vector.broadcast %cst_32 : f32 to vector<1x128xf32>
    %126 = arith.addf %125, %124 : vector<1x128xf32>
    %127 = arith.divf %125, %126 : vector<1x128xf32>
    %128 = math.tanh %122 : vector<1x128xf32>
    %129 = vector.extract_strided_slice %127 {offsets = [0, 0], sizes = [1, 32], strides = [1, 1]} : vector<1x128xf32> to vector<1x32xf32>
    %130 = vector.extract_strided_slice %127 {offsets = [0, 32], sizes = [1, 32], strides = [1, 1]} : vector<1x128xf32> to vector<1x32xf32>
    %131 = vector.extract_strided_slice %128 {offsets = [0, 64], sizes = [1, 32], strides = [1, 1]} : vector<1x128xf32> to vector<1x32xf32>
    %132 = vector.extract_strided_slice %127 {offsets = [0, 96], sizes = [1, 32], strides = [1, 1]} : vector<1x128xf32> to vector<1x32xf32>
    %133 = arith.mulf %129, %117 : vector<1x32xf32>
    %134 = arith.mulf %130, %131 : vector<1x32xf32>
    %135 = arith.addf %133, %134 : vector<1x32xf32>
    %136 = math.tanh %135 : vector<1x32xf32>
    %137 = arith.mulf %132, %136 : vector<1x32xf32>
    %c7 = arith.constant 7 : index
    %c0_33 = arith.constant 0 : index
    %138 = vector.load %arg3[%c7, %c0_33] : memref<8x128xf32, #tpu.memory_space<vmem>>, vector<1x128xf32>
    %cst_34 = arith.constant dense<0.000000e+00> : vector<1x128xf32>
    %139 = tpu.matmul %137, %1, %cst_34 {dimension_numbers = #tpu.dot_dimension_numbers<[1], [0], [0], [1], [0, 0, 1, 1], [], []>} : vector<1x32xf32>, vector<32x128xf32>, vector<1x128xf32> -> vector<1x128xf32>
    %140 = arith.addf %138, %139 : vector<1x128xf32>
    %141 = arith.negf %140 : vector<1x128xf32>
    %142 = math.exp %141 : vector<1x128xf32>
    %cst_35 = arith.constant 1.000000e+00 : f32
    %143 = vector.broadcast %cst_35 : f32 to vector<1x128xf32>
    %144 = arith.addf %143, %142 : vector<1x128xf32>
    %145 = arith.divf %143, %144 : vector<1x128xf32>
    %146 = vector.extract_strided_slice %145 {offsets = [0, 96], sizes = [1, 32], strides = [1, 1]} : vector<1x128xf32> to vector<1x32xf32>
    %cst_36 = arith.constant dense<0.000000e+00> : vector<1x128xf32>
    %147 = tpu.matmul %146, %3, %cst_36 {dimension_numbers = #tpu.dot_dimension_numbers<[1], [0], [0], [1], [0, 0, 1, 1], [], []>} : vector<1x32xf32>, vector<32x128xf32>, vector<1x128xf32> -> vector<1x128xf32>
    %148 = arith.addf %147, %4 : vector<1x128xf32>
    %149 = tpu.iota {dimensions = array<i32: 1>} : vector<1x128xi32>
    %c10_i32 = arith.constant 10 : i32
    %150 = vector.broadcast %c10_i32 : i32 to vector<1x128xi32>
    %151 = arith.cmpi slt, %149, %150 : vector<1x128xi32>
    %cst_37 = arith.constant 0xFF800000 : f32
    %152 = vector.broadcast %cst_37 : f32 to vector<1x128xf32>
    %153 = arith.select %151, %148, %152 : vector<1x128xi1>, vector<1x128xf32>
    %cst_38 = arith.constant dense<0xFF800000> : vector<1xf32>
    %154 = vector.multi_reduction <maximumf>, %153, %cst_38 [1] : vector<1x128xf32> to vector<1xf32>
    %155 = vector.shape_cast %154 : vector<1xf32> to vector<1x1xf32>
    %156 = vector.broadcast %155 : vector<1x1xf32> to vector<1x128xf32>
    %157 = arith.subf %148, %156 : vector<1x128xf32>
    %158 = math.exp %157 : vector<1x128xf32>
    %cst_39 = arith.constant 0.000000e+00 : f32
    %159 = vector.broadcast %cst_39 : f32 to vector<1x128xf32>
    %160 = arith.select %151, %158, %159 : vector<1x128xi1>, vector<1x128xf32>
    %cst_40 = arith.constant dense<0.000000e+00> : vector<1xf32>
    %161 = vector.multi_reduction <add>, %160, %cst_40 [1] : vector<1x128xf32> to vector<1xf32>
    %162 = vector.shape_cast %161 : vector<1xf32> to vector<1x1xf32>
    %163 = math.log %162 : vector<1x1xf32>
    %164 = arith.addf %155, %163 : vector<1x1xf32>
    %165 = vector.broadcast %164 : vector<1x1xf32> to vector<1x128xf32>
    %166 = arith.subf %148, %165 : vector<1x128xf32>
    %c0_41 = arith.constant 0 : index
    %c0_42 = arith.constant 0 : index
    %167 = vector.load %arg2[%c0_41, %c0_42] : memref<1x128xf32, #tpu.memory_space<vmem>>, vector<1x128xf32>
    tpu.vector_store %arg2[%c0_41, %c0_42], %166 {strides = array<i32>} : memref<1x128xf32, #tpu.memory_space<vmem>>, vector<1x128xf32>,
    return
  }
}

</mosaic_0001>

<bundles_post_ra>
// kernel: tpu_custom_call.1
= control target key start
LH: loop header
LB: loop body
LE: loop exit
PB: predicated region body
PF: predicated region fallthrough
CT: control target
= control target key end

     0   :  { %7 = vsyncpa [#allocation4], 0  ;;  %s1649_s0 = inlined_call_operand.hbm [shape: f32[8,128], index: 0, kind: input, shape index: {}]   ;;  %s1650_s1 = inlined_call_operand.hbm [shape: f32[208,128], index: 1, kind: input, shape index: {}]   ;;  %s1651_s2 = inlined_call_operand.hbm [shape: f32[1,128], index: 2, kind: output, shape index: {}]  }
   0x1   :  { %8 = vsyncpa [#allocation7], 0 }
   0x2   :  { %9 = vsyncpa [#allocation5], 0  ;;  %s1477_s9 = smov [#allocation3]   ;;  %s1478_s11 = smov [#allocation6]  }
   0x3   :  { %s16_s10 = sshll.u32 %s1477_s9, 4  ;;  %s25_s12 = sshll.u32 %s1478_s11, 4  ;;  %s17_s10 = int_to_ptr.vmem [resolvable:$true] %s16_s10  ;;  %s1502_s12 = int_to_ptr.vmem [resolvable:$true] %s25_s12 }
   0x4   :  { %s1405_s15 = scalar_lea.hbm %s1649_s0, 128 }
   0x5   :  { %p1406_p0 = scmp.ne.s32.totalorder %s1649_s0, %s1405_s15  ;;  %p1409_p1 = scmp.lt.u32.totalorder %s1405_s15, %s1649_s0 }
   0x7   :  { %p1411_p2 = pnand %p1409_p1, %p1406_p0 }
   0x9   :  { %1414 = shalt.err (!%p1411_p2)
}
   0xa   :  { %s1415_s20 = scalar_lea.vmem %s17_s10, 128  ;;  %p1420_p4 = scmp.lt.s32.totalorder %s17_s10, %s17_s10 }
   0xb   :  { %p1416_p3 = scmp.ne.s32.totalorder %s17_s10, %s1415_s20  ;;  %p1421_p5 = scmp.lt.s32.totalorder %s1415_s20, %s1415_s20 }
   0xd   :  { %p1422_p6 = por %p1421_p5, %p1420_p4 }
   0xf   :  { %p1423_p7 = pnand %p1422_p6, %p1416_p3 }
  0x11   :  { %1426 = shalt.err (!%p1423_p7)
}
  0x12   :  { %19 = dma.hbm_to_vmem [thread:$0]  %s1649_s0, 128, %s17_s10, [#allocation4]  }
  0x13   :  { %s1427_s25 = scalar_lea.hbm %s1650_s1, 3328 }
  0x14   :  { %p1428_p8 = scmp.ne.s32.totalorder %s1650_s1, %s1427_s25  ;;  %p1431_p9 = scmp.lt.u32.totalorder %s1427_s25, %s1650_s1 }
  0x16   :  { %p1433_p10 = pnand %p1431_p9, %p1428_p8 }
  0x18   :  { %1436 = shalt.err (!%p1433_p10)
}
  0x19   :  { %s1437_s30 = scalar_lea.vmem %s1502_s12, 3328  ;;  %p1442_p12 = scmp.lt.s32.totalorder %s1502_s12, %s1502_s12 }
  0x1a   :  { %p1438_p11 = scmp.ne.s32.totalorder %s1502_s12, %s1437_s30  ;;  %p1443_p13 = scmp.lt.s32.totalorder %s1437_s30, %s1437_s30 }
  0x1c   :  { %p1444_p0 = por %p1443_p13, %p1442_p12 }
  0x1e   :  { %p1445_p1 = pnand %p1444_p0, %p1438_p11 }
  0x20   :  { %1448 = shalt.err (!%p1445_p1)
}
  0x21   :  { %s1479_s0 = smov 128   ;;  %s1480_s3 = smov 8  }
  0x22   :  { %31 = dma.hbm_to_vmem [thread:$0]  %s1650_s1, 3328, %s1502_s12, [#allocation7], %s1479_s0, %s1479_s0, %s1480_s3  }
  0x23   :  { %1471 = dma.done.wait [#allocation4], 128  }
  0x24   :  { %1472 = vsyncadd [#allocation4], 4294967168 }
  0x25   :  { %1473 = dma.done.wait [#allocation7], 3328  }
  0x26   :  { %1474 = vsyncadd [#allocation7], 4294963968  ;;  %v1481_v0 = vmov 0.0|0.0   ;;  %vm1482_vm0 = vmmov 0   ;;  %v1483_v1 = vmov 0.0   ;;  %v38_v2 = vld [vmem:[#allocation6] sm:$0xff] }
  0x27   :  { %1253 = vmatprep.subr.bf16.mxu0 %v1481_v0  ;;  %1151 = vmatprep.mubr.msk.f32.mxu0 %vm1482_vm0, %v1483_v1  ;;  %v39_v3 = vld [vmem:[#allocation6 + $0x8] sm:$0xff]  ;;  %v40_v4 = vld [vmem:[#allocation6 + $0x10] sm:$0xff]  ;;  %v41_v6 = vld [vmem:[#allocation6 + $0x18] sm:$0xff]  ;;  %s1484_s1 = smov 96   ;;  %s1485_s6 = smov 32   ;;  %vm141_vm1 = vcmask 261120  }
  0x28   :  { %1277 = vmatprep.subr.bf16.mxu1 %v1481_v0  ;;  %1162 = vmatprep.mubr.msk.f32.mxu1 %vm1482_vm0, %v1483_v1  ;;  %v1254_v5 = vpack.c.bf16 %v39_v3, %v38_v2  ;;  %v1257_v7 = vpack.c.bf16 %v41_v6, %v40_v4  ;;  %v42_v8 = vld [vmem:[#allocation6 + $0x20] sm:$0xff]  ;;  %v43_v9 = vld [vmem:[#allocation6 + $0x28] sm:$0xff]  ;;  %v56_v12 = vld [vmem:[#allocation6 + $0x90] sm:$0xff]  ;;  %vm1008_vm3 = vcmask 1040384   ;;  %s1486_s7 = smov [#allocation8]  }
  0x29   :  { %v54_v10 = vld [vmem:[#allocation6 + $0x80] sm:$0xff]  ;;  %v55_v11 = vld [vmem:[#allocation6 + $0x88] sm:$0xff]  ;;  %v57_v13 = vld [vmem:[#allocation6 + $0x98] sm:$0xff]  ;;  %v1260_v14 = vpack.c.bf16 %v43_v9, %v42_v8  ;;  %s1030_s8 = sshll.u32 %s1486_s7, 4  ;;  %s1031_s8 = int_to_ptr.vmem [resolvable:$true] %s1030_s8 }
  0x2a   :  { %1255 = vmatpush3.bf16.msra.mxu0 %v1254_v5  ;;  %v1540_v15 = vpack.c.bf16 %v55_v11, %v54_v10  ;;  %v44_v16 = vld [vmem:[#allocation6 + $0x30] sm:$0xff]  ;;  %v45_v17 = vld [vmem:[#allocation6 + $0x38] sm:$0xff]  ;;  %v1544_v18 = vpack.c.bf16 %v57_v13, %v56_v12  ;;  %v46_v20 = vld [vmem:[#allocation6 + $0x40] sm:$0xff]  ;;  %s1449_s9 = scalar_lea.vmem %s1031_s8, 16  ;;  %s1453_s10 = scalar_lea.vmem %s1031_s8, 32 }
  0x2b   :  { %1256 = vmatprep.subr.bf16.mxu0 %v1481_v0  ;;  %v1263_v19 = vpack.c.bf16 %v45_v17, %v44_v16  ;;  %v47_v21 = vld [vmem:[#allocation6 + $0x48] sm:$0xff]  ;;  %v48_v23 = vld [vmem:[#allocation6 + $0x50] sm:$0xff]  ;;  %v49_v24 = vld [vmem:[#allocation6 + $0x58] sm:$0xff]  ;;  %p1450_p2 = scmp.ne.s32.totalorder %s1031_s8, %s1449_s9  ;;  %p1454_p3 = scmp.lt.s32.totalorder %s1031_s8, %s1031_s8 }
  0x2c   :  { %1279 = vmatpush3.bf16.msra.mxu1 %v1540_v15  ;;  %v1266_v22 = vpack.c.bf16 %v47_v21, %v46_v20  ;;  %v1269_v25 = vpack.c.bf16 %v49_v24, %v48_v23  ;;  %v50_v26 = vld [vmem:[#allocation6 + $0x60] sm:$0xff]  ;;  %v51_v27 = vld [vmem:[#allocation6 + $0x68] sm:$0xff]  ;;  %v52_v29 = vld [vmem:[#allocation6 + $0x70] sm:$0xff]  ;;  %p1455_p4 = scmp.lt.s32.totalorder %s1453_s10, %s1449_s9 }
  0x2d   :  { %1280 = vmatprep.subr.bf16.mxu1 %v1481_v0  ;;  %v1272_v28 = vpack.c.bf16 %v51_v27, %v50_v26  ;;  %v53_v30 = vld [vmem:[#allocation6 + $0x78] sm:$0xff]  ;;  %v1040_v35 = vld [vmem:[#allocation6 + $0xa0] ss:$0 sm:$0xff] }
  0x2e   :  { %1258 = vmatpush3.bf16.msra.mxu0 %v1257_v7  ;;  %v1275_v31 = vpack.c.bf16 %v53_v30, %v52_v29  ;;  %v64_v32 = vld [vmem:[#allocation3] sm:$0xff]  ;;  %p1456_p5 = por %p1455_p4, %p1454_p3 }
  0x2f   :  { %1259 = vmatprep.subr.bf16.mxu0 %v1481_v0 }
  0x30   :  { %1282 = vmatpush3.bf16.msra.mxu1 %v1544_v18  ;;  %p1457_p6 = pnand %p1456_p5, %p1450_p2 }
  0x31   :  { %1283 = vmatprep.subr.bf16.mxu1 %v1481_v0 }
  0x32   :  { %1261 = vmatpush3.bf16.msra.mxu0 %v1260_v14 }
  0x33   :  { %1262 = vmatprep.subr.bf16.mxu0 %v1481_v0  ;;  %1163 = vmatmul.mubr.f32.vlgmr.msra.gmra.mrb[0].mxu1 %v1483_v1 }
  0x34   :  { %1285 = vmatpush3.bf16.msra.mxu1 %v1540_v15  ;;  %1173 = vmatprep.mubr.msk.f32.mxu1 %vm1482_vm0, %v1483_v1 }
  0x35   :  { %1286 = vmatprep.subr.bf16.mxu1 %v1481_v0 }
  0x36   :  { %1264 = vmatpush3.bf16.msra.mxu0 %v1263_v19 }
  0x37   :  { %1265 = vmatprep.subr.bf16.mxu0 %v1481_v0 }
  0x38   :  { %1288 = vmatpush3.bf16.msra.mxu1 %v1544_v18 }
  0x39   :  { %1289 = vmatprep.subr.bf16.mxu1 %v1481_v0 }
  0x3a   :  { %1267 = vmatpush3.bf16.msra.mxu0 %v1266_v22 }
  0x3b   :  { %1268 = vmatprep.subr.bf16.mxu0 %v1481_v0 }
  0x3e   :  { %1270 = vmatpush3.bf16.msra.mxu0 %v1269_v25 }
  0x3f   :  { %1271 = vmatprep.subr.bf16.mxu0 %v1481_v0 }
  0x42   :  { %1273 = vmatpush3.bf16.msra.mxu0 %v1272_v28 }
  0x43   :  { %1274 = vmatprep.subr.bf16.mxu0 %v1481_v0 }
  0x46   :  { %1276 = vmatpush3.bf16.msra.mxu0 %v1275_v31 }
  0x47   :  { %1301 = vmatprep.subr.bf16.mxu0 %v1481_v0 }
  0x49   :  { %1152 = vmatmul.mubr.f32.vlgmr.msra.gmra.mrb[0].mxu0 %v64_v32 }
  0x4a   :  { %1303 = vmatpush3.bf16.msra.mxu0 %v1540_v15  ;;  %1206 = vmatprep.mubr.msk.f32.mxu0 %vm1482_vm0, %v1483_v1 }
  0x4b   :  { %1304 = vmatprep.subr.bf16.mxu0 %v1481_v0 }
  0x4e   :  { %1306 = vmatpush3.bf16.msra.mxu0 %v1544_v18 }
  0x4f   :  { %1313 = vmatprep.subr.bf16.mxu0 %v1481_v0 }
 0x106   :  { %v211_v33 = vpop.f32.mrb[0].mxu1 }
 0x107   :  { %v1164_v34 = vpop.f32.mrb[1].mxu1 }
 0x11c   :  { %v135_v36 = vpop.f32.mrb[0].mxu0 }
 0x11d   :  { %v136_v37 = vadd.f32 %v1040_v35, %v135_v36  ;;  %v1153_v38 = vpop.f32.mrb[1].mxu0 }
 0x11f   :  { %139 = vst [vmem:[#allocation2] sm:$0xff] %v136_v37 }
 0x126   :  { %v140_v39 = vld [vmem:[#allocation2] sm:$0x1]  ;;  %v240_v55 = vld [vmem:[#allocation2 + $0x1] sm:$0x1]  ;;  %v341_v11 = vld [vmem:[#allocation2 + $0x2] sm:$0x1] }
 0x127   :  { %v215_v40 = vadd.f32 %v211_v33, %v140_v39  ;;  %v442_v31 = vld [vmem:[#allocation2 + $0x3] sm:$0x1] }
 0x129   :  { %1341 = vtanh.f32 %v215_v40  ;;  %v1041_v42 = vmul.f32 -1.442695, %v215_v40 }
 0x12b   :  { %1343 = vpow2.f32 %v1041_v42 }
 0x133   :  { %v1342_v41 = vpop.eup %1341 }
 0x134   :  { %225 = vrot.lane.b32.xlu0 %v1342_v41, %s1484_s1 }
 0x135   :  { %v1344_v43 = vpop.eup %1343 }
 0x136   :  { %v219_v44 = vadd.f32 1.0, %v1344_v43 }
 0x138   :  { %1345 = vrcp.f32 %v219_v44 }
 0x142   :  { %v1346_v45 = vpop.eup %1345 }
 0x143   :  { %v223_v48 = vmul.f32 0.0, %v1346_v45 }
 0x1a6   :  { %v226_v46 = vpop.permute.xlu0 %225 }
 0x1a7   :  { %v228_v47 = vmul.f32 %v1346_v45, %v226_v46 }
 0x1a9   :  { %230 = vrot.lane.b32.xlu0 %v228_v47, %s1484_s1 }
 0x21b   :  { %v231_v49 = vpop.permute.xlu0 %230 }
 0x21c   :  { %v233_v50 = vadd.f32 %v231_v49, %v223_v48  ;;  %v543_v49 = vld [vmem:[#allocation2 + $0x4] sm:$0x1] }
 0x21e   :  { %1347 = vtanh.f32 %v233_v50 }
 0x228   :  { %v1348_v51 = vpop.eup %1347 }
 0x229   :  { %236 = vrot.lane.b32.xlu1 %v1348_v51, %s1484_s1 }
 0x29b   :  { %v237_v52 = vpop.permute.xlu1 %236 }
 0x29c   :  { %v239_v53 = vmul.f32 %v1346_v45, %v237_v52 }
 0x29e   :  { %242 = vrot.lane.b32.xlu1 %v239_v53, %s1485_s6 }
 0x310   :  { %v243_v54 = vpop.permute.xlu1 %242 }
 0x311   :  { %1174 = vmatmul.mubr.msk.f32.vlgmr.msra.gmra.mrb[2].mxu1 %vm141_vm1, %v243_v54 }
 0x312   :  { %1291 = vmatpush3.bf16.msra.mxu1 %v1540_v15  ;;  %1184 = vmatprep.mubr.msk.f32.mxu1 %vm1482_vm0, %v1483_v1 }
 0x313   :  { %1292 = vmatprep.subr.bf16.mxu1 %v1481_v0 }
 0x316   :  { %1294 = vmatpush3.bf16.msra.mxu1 %v1544_v18 }
 0x317   :  { %1295 = vmatprep.subr.bf16.mxu1 %v1481_v0 }
 0x3e4   :  { %v312_v56 = vpop.f32.mrb[2].mxu1 }
 0x3e5   :  { %v316_v57 = vadd.f32 %v312_v56, %v240_v55  ;;  %v1175_v58 = vpop.f32.mrb[3].mxu1 }
 0x3e7   :  { %1349 = vtanh.f32 %v316_v57  ;;  %v1043_v60 = vmul.f32 -1.442695, %v316_v57 }
 0x3e9   :  { %1351 = vpow2.f32 %v1043_v60 }
 0x3f1   :  { %v1350_v59 = vpop.eup %1349 }
 0x3f2   :  { %326 = vrot.lane.b32.xlu0 %v1350_v59, %s1484_s1 }
 0x3f3   :  { %v1352_v61 = vpop.eup %1351 }
 0x3f4   :  { %v320_v62 = vadd.f32 1.0, %v1352_v61 }
 0x3f6   :  { %1353 = vrcp.f32 %v320_v62 }
 0x400   :  { %v1354_v63 = vpop.eup %1353 }
 0x401   :  { %v324_v4 = vmul.f32 %v1354_v63, %v233_v50 }
 0x464   :  { %v327_v2 = vpop.permute.xlu0 %326 }
 0x465   :  { %v329_v3 = vmul.f32 %v1354_v63, %v327_v2 }
 0x467   :  { %331 = vrot.lane.b32.xlu1 %v329_v3, %s1484_s1 }
 0x4d9   :  { %v332_v5 = vpop.permute.xlu1 %331 }
 0x4da   :  { %v334_v6 = vadd.f32 %v332_v5, %v324_v4  ;;  %v644_v5 = vld [vmem:[#allocation2 + $0x5] sm:$0x1] }
 0x4dc   :  { %1355 = vtanh.f32 %v334_v6 }
 0x4e6   :  { %v1356_v7 = vpop.eup %1355 }
 0x4e7   :  { %337 = vrot.lane.b32.xlu0 %v1356_v7, %s1484_s1 }
 0x559   :  { %v338_v8 = vpop.permute.xlu0 %337 }
 0x55a   :  { %v340_v9 = vmul.f32 %v1354_v63, %v338_v8 }
 0x55c   :  { %343 = vrot.lane.b32.xlu1 %v340_v9, %s1485_s6 }
 0x5ce   :  { %v344_v10 = vpop.permute.xlu1 %343 }
 0x5cf   :  { %1185 = vmatmul.mubr.msk.f32.vlgmr.msra.gmra.mrb[4].mxu1 %vm141_vm1, %v344_v10 }
 0x5d0   :  { %1297 = vmatpush3.bf16.msra.mxu1 %v1540_v15  ;;  %1195 = vmatprep.mubr.msk.f32.mxu1 %vm1482_vm0, %v1483_v1 }
 0x5d1   :  { %1298 = vmatprep.subr.bf16.mxu1 %v1481_v0 }
 0x5d4   :  { %1300 = vmatpush3.bf16.msra.mxu1 %v1544_v18 }
 0x5d5   :  { %1307 = vmatprep.subr.bf16.mxu1 %v1481_v0 }
 0x6a2   :  { %v413_v12 = vpop.f32.mrb[4].mxu1 }
 0x6a3   :  { %v417_v13 = vadd.f32 %v413_v12, %v341_v11  ;;  %v1186_v14 = vpop.f32.mrb[5].mxu1 }
 0x6a5   :  { %1357 = vtanh.f32 %v417_v13  ;;  %v1045_v17 = vmul.f32 -1.442695, %v417_v13 }
 0x6a7   :  { %1359 = vpow2.f32 %v1045_v17 }
 0x6af   :  { %v1358_v16 = vpop.eup %1357 }
 0x6b0   :  { %427 = vrot.lane.b32.xlu0 %v1358_v16, %s1484_s1 }
 0x6b1   :  { %v1360_v19 = vpop.eup %1359 }
 0x6b2   :  { %v421_v20 = vadd.f32 1.0, %v1360_v19 }
 0x6b4   :  { %1361 = vrcp.f32 %v421_v20 }
 0x6be   :  { %v1362_v21 = vpop.eup %1361 }
 0x6bf   :  { %v425_v24 = vmul.f32 %v1362_v21, %v334_v6 }
 0x722   :  { %v428_v22 = vpop.permute.xlu0 %427 }
 0x723   :  { %v430_v23 = vmul.f32 %v1362_v21, %v428_v22 }
 0x725   :  { %432 = vrot.lane.b32.xlu1 %v430_v23, %s1484_s1  ;;  %v745_v23 = vld [vmem:[#allocation2 + $0x6] sm:$0x1] }
 0x797   :  { %v433_v25 = vpop.permute.xlu1 %432 }
 0x798   :  { %v435_v26 = vadd.f32 %v433_v25, %v425_v24 }
 0x79a   :  { %1363 = vtanh.f32 %v435_v26 }
 0x7a4   :  { %v1364_v27 = vpop.eup %1363 }
 0x7a5   :  { %438 = vrot.lane.b32.xlu0 %v1364_v27, %s1484_s1 }
 0x817   :  { %v439_v28 = vpop.permute.xlu0 %438 }
 0x818   :  { %v441_v29 = vmul.f32 %v1362_v21, %v439_v28 }
 0x81a   :  { %444 = vrot.lane.b32.xlu1 %v441_v29, %s1485_s6 }
 0x88c   :  { %v445_v30 = vpop.permute.xlu1 %444 }
 0x88d   :  { %1196 = vmatmul.mubr.msk.f32.vlgmr.msra.gmra.mrb[6].mxu1 %vm141_vm1, %v445_v30 }
 0x88e   :  { %1309 = vmatpush3.bf16.msra.mxu1 %v1540_v15  ;;  %1217 = vmatprep.mubr.msk.f32.mxu1 %vm1482_vm0, %v1483_v1 }
 0x88f   :  { %1310 = vmatprep.subr.bf16.mxu1 %v1481_v0 }
 0x892   :  { %1312 = vmatpush3.bf16.msra.mxu1 %v1544_v18 }
 0x893   :  { %1319 = vmatprep.subr.bf16.mxu1 %v1481_v0 }
 0x960   :  { %v514_v32 = vpop.f32.mrb[6].mxu1 }
 0x961   :  { %v518_v33 = vadd.f32 %v514_v32, %v442_v31  ;;  %v1197_v34 = vpop.f32.mrb[7].mxu1 }
 0x963   :  { %1365 = vtanh.f32 %v518_v33  ;;  %v1047_v36 = vmul.f32 -1.442695, %v518_v33 }
 0x965   :  { %1367 = vpow2.f32 %v1047_v36 }
 0x96d   :  { %v1366_v35 = vpop.eup %1365 }
 0x96e   :  { %528 = vrot.lane.b32.xlu0 %v1366_v35, %s1484_s1 }
 0x96f   :  { %v1368_v37 = vpop.eup %1367 }
 0x970   :  { %v522_v38 = vadd.f32 1.0, %v1368_v37 }
 0x972   :  { %1369 = vrcp.f32 %v522_v38 }
 0x97c   :  { %v1370_v39 = vpop.eup %1369 }
 0x97d   :  { %v526_v42 = vmul.f32 %v1370_v39, %v435_v26 }
 0x9e0   :  { %v529_v40 = vpop.permute.xlu0 %528 }
 0x9e1   :  { %v531_v41 = vmul.f32 %v1370_v39, %v529_v40  ;;  %v59_v40 = vld [vmem:[#allocation6 + $0xa8] sm:$0xff] }
 0x9e3   :  { %533 = vrot.lane.b32.xlu1 %v531_v41, %s1484_s1  ;;  %v60_v41 = vld [vmem:[#allocation6 + $0xb0] sm:$0xff] }
 0xa55   :  { %v534_v43 = vpop.permute.xlu1 %533 }
 0xa56   :  { %v536_v44 = vadd.f32 %v534_v43, %v526_v42  ;;  %v61_v42 = vld [vmem:[#allocation6 + $0xb8] sm:$0xff]  ;;  %v1326_v43 = vpack.c.bf16 %v60_v41, %v59_v40 }
 0xa58   :  { %1371 = vtanh.f32 %v536_v44 }
 0xa62   :  { %v1372_v45 = vpop.eup %1371 }
 0xa63   :  { %539 = vrot.lane.b32.xlu0 %v1372_v45, %s1484_s1 }
 0xad5   :  { %v540_v46 = vpop.permute.xlu0 %539 }
 0xad6   :  { %v542_v47 = vmul.f32 %v1370_v39, %v540_v46  ;;  %v846_v46 = vld [vmem:[#allocation2 + $0x7] sm:$0x1] }
 0xad8   :  { %545 = vrot.lane.b32.xlu1 %v542_v47, %s1485_s6 }
 0xb4a   :  { %v546_v48 = vpop.permute.xlu1 %545 }
 0xb4b   :  { %1207 = vmatmul.mubr.msk.f32.vlgmr.msra.gmra.mrb[2].mxu0 %vm141_vm1, %v546_v48 }
 0xb4c   :  { %1315 = vmatpush3.bf16.msra.mxu0 %v1540_v15  ;;  %1228 = vmatprep.mubr.msk.f32.mxu0 %vm1482_vm0, %v1483_v1 }
 0xb4d   :  { %1316 = vmatprep.subr.bf16.mxu0 %v1481_v0 }
 0xb50   :  { %1318 = vmatpush3.bf16.msra.mxu0 %v1544_v18 }
 0xb51   :  { %1325 = vmatprep.subr.bf16.mxu0 %v1481_v0 }
 0xc1e   :  { %v615_v50 = vpop.f32.mrb[2].mxu0 }
 0xc1f   :  { %v619_v51 = vadd.f32 %v615_v50, %v543_v49  ;;  %v1208_v52 = vpop.f32.mrb[3].mxu0 }
 0xc21   :  { %1373 = vtanh.f32 %v619_v51  ;;  %v1049_v54 = vmul.f32 -1.442695, %v619_v51 }
 0xc23   :  { %1375 = vpow2.f32 %v1049_v54 }
 0xc2b   :  { %v1374_v53 = vpop.eup %1373 }
 0xc2c   :  { %629 = vrot.lane.b32.xlu0 %v1374_v53, %s1484_s1 }
 0xc2d   :  { %v1376_v55 = vpop.eup %1375 }
 0xc2e   :  { %v623_v56 = vadd.f32 1.0, %v1376_v55  ;;  %v1004_v55 = vlaneseq }
 0xc30   :  { %1377 = vrcp.f32 %v623_v56  ;;  %v1005_v56 = vand.u32 127, %v1004_v55 }
 0xc32   :  { %vm1006_vm2 = vcmp.lt.s32.totalorder %v1005_v56, 10 }
 0xc3a   :  { %v1378_v57 = vpop.eup %1377 }
 0xc3b   :  { %v627_v60 = vmul.f32 %v1378_v57, %v536_v44  ;;  %v62_v44 = vld [vmem:[#allocation6 + $0xc0] sm:$0xff] }
 0xc3c   :  { %v1329_v45 = vpack.c.bf16 %v62_v44, %v61_v42 }
 0xc9e   :  { %v630_v58 = vpop.permute.xlu0 %629 }
 0xc9f   :  { %v632_v59 = vmul.f32 %v1378_v57, %v630_v58 }
 0xca1   :  { %634 = vrot.lane.b32.xlu1 %v632_v59, %s1484_s1 }
 0xd13   :  { %v635_v61 = vpop.permute.xlu1 %634 }
 0xd14   :  { %v637_v62 = vadd.f32 %v635_v61, %v627_v60 }
 0xd16   :  { %1379 = vtanh.f32 %v637_v62 }
 0xd20   :  { %v1380_v63 = vpop.eup %1379 }
 0xd21   :  { %640 = vrot.lane.b32.xlu0 %v1380_v63, %s1484_s1 }
 0xd93   :  { %v641_v2 = vpop.permute.xlu0 %640 }
 0xd94   :  { %v643_v3 = vmul.f32 %v1378_v57, %v641_v2  ;;  %v63_v57 = vld [vmem:[#allocation6 + $0xc8] sm:$0x1] }
 0xd96   :  { %646 = vrot.lane.b32.xlu1 %v643_v3, %s1485_s6 }
 0xe08   :  { %v647_v4 = vpop.permute.xlu1 %646 }
 0xe09   :  { %1218 = vmatmul.mubr.msk.f32.vlgmr.msra.gmra.mrb[8].mxu1 %vm141_vm1, %v647_v4 }
 0xe0a   :  { %1321 = vmatpush3.bf16.msra.mxu1 %v1540_v15  ;;  %1239 = vmatprep.mubr.msk.f32.mxu1 %vm1482_vm0, %v1483_v1 }
 0xe0b   :  { %1322 = vmatprep.subr.bf16.mxu1 %v1481_v0 }
 0xe0e   :  { %1324 = vmatpush3.bf16.msra.mxu1 %v1544_v18 }
 0xedc   :  { %v716_v6 = vpop.f32.mrb[8].mxu1 }
 0xedd   :  { %v720_v7 = vadd.f32 %v716_v6, %v644_v5  ;;  %v1219_v8 = vpop.f32.mrb[9].mxu1 }
 0xedf   :  { %1381 = vtanh.f32 %v720_v7  ;;  %v1051_v10 = vmul.f32 -1.442695, %v720_v7 }
 0xee1   :  { %1383 = vpow2.f32 %v1051_v10 }
 0xee9   :  { %v1382_v9 = vpop.eup %1381 }
 0xeea   :  { %730 = vrot.lane.b32.xlu0 %v1382_v9, %s1484_s1 }
 0xeeb   :  { %v1384_v11 = vpop.eup %1383 }
 0xeec   :  { %v724_v12 = vadd.f32 1.0, %v1384_v11 }
 0xeee   :  { %1385 = vrcp.f32 %v724_v12 }
 0xef8   :  { %v1386_v15 = vpop.eup %1385 }
 0xef9   :  { %v728_v16 = vmul.f32 %v1386_v15, %v637_v62 }
 0xf5c   :  { %v731_v13 = vpop.permute.xlu0 %730 }
 0xf5d   :  { %v733_v14 = vmul.f32 %v1386_v15, %v731_v13 }
 0xf5f   :  { %735 = vrot.lane.b32.xlu1 %v733_v14, %s1484_s1 }
 0xfd1   :  { %v736_v18 = vpop.permute.xlu1 %735 }
 0xfd2   :  { %v738_v17 = vadd.f32 %v736_v18, %v728_v16 }
 0xfd4   :  { %1387 = vtanh.f32 %v738_v17 }
 0xfde   :  { %v1388_v19 = vpop.eup %1387 }
 0xfdf   :  { %741 = vrot.lane.b32.xlu0 %v1388_v19, %s1484_s1 }
0x1051   :  { %v742_v20 = vpop.permute.xlu0 %741 }
0x1052   :  { %v744_v21 = vmul.f32 %v1386_v15, %v742_v20 }
0x1054   :  { %747 = vrot.lane.b32.xlu1 %v744_v21, %s1485_s6 }
0x10c6   :  { %v748_v22 = vpop.permute.xlu1 %747 }
0x10c7   :  { %1229 = vmatmul.mubr.msk.f32.vlgmr.msra.gmra.mrb[4].mxu0 %vm141_vm1, %v748_v22 }
0x10c8   :  { %1250 = vmatprep.mubr.msk.f32.mxu0 %vm1482_vm0, %v1483_v1  ;;  %1327 = vmatpush3.bf16.msra.mxu0 %v1326_v43 }
0x10c9   :  { %1328 = vmatprep.subr.bf16.mxu0 %v1481_v0 }
0x10cc   :  { %1330 = vmatpush3.bf16.msra.mxu0 %v1329_v45 }
0x119a   :  { %v817_v24 = vpop.f32.mrb[4].mxu0 }
0x119b   :  { %v821_v25 = vadd.f32 %v817_v24, %v745_v23  ;;  %v1230_v26 = vpop.f32.mrb[5].mxu0 }
0x119d   :  { %1389 = vtanh.f32 %v821_v25  ;;  %v1053_v28 = vmul.f32 -1.442695, %v821_v25 }
0x119f   :  { %1391 = vpow2.f32 %v1053_v28 }
0x11a7   :  { %v1390_v27 = vpop.eup %1389 }
0x11a8   :  { %831 = vrot.lane.b32.xlu0 %v1390_v27, %s1484_s1 }
0x11a9   :  { %v1392_v29 = vpop.eup %1391 }
0x11aa   :  { %v825_v30 = vadd.f32 1.0, %v1392_v29 }
0x11ac   :  { %1393 = vrcp.f32 %v825_v30 }
0x11b6   :  { %v1394_v31 = vpop.eup %1393 }
0x11b7   :  { %v829_v34 = vmul.f32 %v1394_v31, %v738_v17 }
0x121a   :  { %v832_v32 = vpop.permute.xlu0 %831 }
0x121b   :  { %v834_v33 = vmul.f32 %v1394_v31, %v832_v32 }
0x121d   :  { %836 = vrot.lane.b32.xlu1 %v834_v33, %s1484_s1 }
0x128f   :  { %v837_v1 = vpop.permute.xlu1 %836 }
0x1290   :  { %v839_v35 = vadd.f32 %v837_v1, %v829_v34 }
0x1292   :  { %1395 = vtanh.f32 %v839_v35 }
0x129c   :  { %v1396_v36 = vpop.eup %1395 }
0x129d   :  { %842 = vrot.lane.b32.xlu0 %v1396_v36, %s1484_s1 }
0x130f   :  { %v843_v37 = vpop.permute.xlu0 %842 }
0x1310   :  { %v845_v38 = vmul.f32 %v1394_v31, %v843_v37 }
0x1312   :  { %848 = vrot.lane.b32.xlu1 %v845_v38, %s1485_s6 }
0x1384   :  { %v849_v39 = vpop.permute.xlu1 %848 }
0x1385   :  { %1240 = vmatmul.mubr.msk.f32.vlgmr.msra.gmra.mrb[10].mxu1 %vm141_vm1, %v849_v39 }
0x1458   :  { %v918_v47 = vpop.f32.mrb[10].mxu1 }
0x1459   :  { %v922_v48 = vadd.f32 %v918_v47, %v846_v46  ;;  %v1241_v49 = vpop.f32.mrb[11].mxu1 }
0x145b   :  { %v1055_v50 = vmul.f32 -1.442695, %v922_v48 }
0x145d   :  { %1397 = vpow2.f32 %v1055_v50 }
0x1467   :  { %v1398_v51 = vpop.eup %1397 }
0x1468   :  { %v926_v52 = vadd.f32 1.0, %v1398_v51 }
0x146a   :  { %1399 = vrcp.f32 %v926_v52 }
0x1474   :  { %v1400_v53 = vpop.eup %1399 }
0x1475   :  { %930 = vrot.lane.b32.xlu0 %v1400_v53, %s1485_s6 }
0x14e7   :  { %v931_v54 = vpop.permute.xlu0 %930 }
0x14e8   :  { %1251 = vmatmul.mubr.msk.f32.vlgmr.msra.gmra.mrb[6].mxu0 %vm141_vm1, %v931_v54 }
0x15bb   :  { %v1000_v0 = vpop.f32.mrb[6].mxu0 }
0x15bc   :  { %v1001_v58 = vadd.f32 %v1000_v0, %v63_v57  ;;  %v1252_v59 = vpop.f32.mrb[7].mxu0 }
0x15be   :  { %v1007_v60 = vsel %vm1006_vm2, %v1001_v58, -inf }
0x15bf   :  { %v1009_v61 = vsel %vm1008_vm3, %v1007_v60, -inf }
0x15c0   :  { %1010 = vmax.xlane.f32.xlu1 %v1009_v61 }
0x164d   :  { %v1011_v62 = vpop.xlane.xlu1 %1010 }
0x164e   :  { %v1012_v63 = vsub.f32 %v1001_v58, %v1011_v62 }
0x1650   :  { %v1013_v2 = vmul.f32 1.442695, %v1012_v63 }
0x1652   :  { %1401 = vpow2.f32 %v1013_v2 }
0x165c   :  { %v1402_v3 = vpop.eup %1401 }
0x165d   :  { %v1015_v4 = vsel %vm1006_vm2, %v1402_v3, 0.0 }
0x165e   :  { %v1016_v5 = vsel %vm1008_vm3, %v1015_v4, 0.0 }
0x165f   :  { %1017 = vadd.xlane.f32.xlu0 %v1016_v5 }
0x16ec   :  { %v1018_v6 = vpop.xlane.xlu0 %1017 }
0x16ed   :  { %1403 = vlog2.f32 %v1018_v6 }
0x16f7   :  { %v1404_v7 = vpop.eup %1403 }
0x16f8   :  { %v1020_v8 = vmul.f32 0.6931472, %v1404_v7 }
0x16fa   :  { %v1021_v9 = vadd.f32 %v1020_v8, %v1011_v62 }
0x16fc   :  { %v1022_v10 = vsub.f32 %v1001_v58, %v1021_v9 }
0x16fe   :  { %1023 = vst [vmem:[#allocation8] sm:$0x1] %v1022_v10 }
0x16ff   :  { %1460 = shalt.err (!%p1457_p6)
}
0x1700   :  { %s1461_s13 = scalar_lea.hbm %s1651_s2, 16 }
0x1701   :  { %p1462_p7 = scmp.ne.s32.totalorder %s1651_s2, %s1461_s13  ;;  %p1465_p8 = scmp.lt.u32.totalorder %s1461_s13, %s1651_s2 }
0x1703   :  { %p1467_p9 = pnand %p1465_p8, %p1462_p7 }
0x1705   :  { %1470 = shalt.err (!%p1467_p9)
}
0x1706   :  { %1033 = dma.vmem_to_hbm [thread:$0]  %s1031_s8, 16, %s1651_s2, [#allocation5]  }
0x1707   :  { %1475 = dma.done.wait [#allocation5], 16  }
0x1708   :  { %1476 = vsyncadd [#allocation5], 4294967280 }
0x1709   :  { %1037 = vsyncpa [#allocation4], 1 }
0x170a   :  { %1038 = vsyncpa [#allocation7], 1 }
0x170b   :  { %1039 = vsyncpa [#allocation5], 1 }

</bundles_post_ra>
